<compile_context>
chip_gen: v5e
topology: v5e:2x2
jax: 0.10.0
libtpu: 0.0.40
codegen_flags: <defaults>
</compile_context>

<pallas_src>
import functools

import jax
import jax.numpy as jnp
from jax.experimental import pallas as pl
from jax.experimental.pallas import tpu as pltpu

OPAD = 128                  # lane-dense padding of the final output slab
MXU_DTYPE = jnp.bfloat16    # matmul-operand dtype (f32 accumulation everywhere)


# ----------------------------------------------------------------------------
# Fused Pallas kernel: merged fc1 -> gate softmax/top-C -> experts -> predict
# ----------------------------------------------------------------------------
def fused_moe_kernel(in_ref,                      # [TB, F+Gin]   bf16
                     w_in_ref, b_in_ref,          # [F+Gin,KH+H]  bf16, [1,KH+H] f32
                     wg2_ref, bg2_ref,            # [H, K] bf16,  [1, K] f32
                     w2_ref, b2_ref,              # [KH, KH] bf16,[1, KH] f32
                     emat_ref,                    # [K, KH] f32   (exact 0/1)
                     wp1t_ref, bp1_ref,           # [KH, H] bf16, [1, H] f32
                     wp2_ref, bp2_ref,            # [H, OPAD] bf16,[1, OPAD] f32
                     place_ref,                   # [K, OPAD] f32 (exact 0/1)
                     y_ref, imp_ref,              # [TB, OPAD] f32, [8, OPAD] f32
                     *, kh, select_experts, tile_b, batch):
    f32 = jnp.float32

    # ---- merged first layer: block-diag [expert fc1 (BN folded) | gate fc1] ---
    z = jnp.dot(in_ref[...], w_in_ref[...], preferred_element_type=f32)
    z = jnp.maximum(z + b_in_ref[...], 0.0)                 # both paths have ReLU
    h1 = z[:, :kh].astype(MXU_DTYPE)                        # expert fc1 out [TB,KH]
    g = z[:, kh:].astype(MXU_DTYPE)                         # gate hidden    [TB,H]

    # ---- gate fc2 + softmax (reciprocal on the EUP slot) ----------------------
    logits = jnp.dot(g, wg2_ref[...], preferred_element_type=f32) + bg2_ref[...]
    m = jnp.max(logits, axis=-1, keepdims=True)
    ex = jnp.exp(logits - m)
    probs = ex * pl.reciprocal(jnp.sum(ex, axis=-1, keepdims=True), approx=True)

    # ---- top-C selection mask (C static, unrolled; lane-axis max is XLU) ------
    # Exact ties may select both tied experts (practically impossible with
    # float softmax values).
    remaining = probs
    mask = jnp.zeros_like(probs)
    for _ in range(select_experts):
        cur = jnp.max(remaining, axis=-1, keepdims=True)
        picked = remaining >= cur
        mask = jnp.maximum(mask, picked.astype(f32))
        remaining = jnp.where(picked, -1e30, remaining)
    sparse = probs * mask                                    # [TB, K] f32

    # ---- expert fc2 (block-diagonal, BN folded) + ReLU ------------------------
    h2 = jnp.dot(h1, w2_ref[...], preferred_element_type=f32)
    h2 = jnp.maximum(h2 + b2_ref[...], 0.0)                  # [TB, KH] f32

    # ---- gate expand (kept f32: exact 0/1 matrix, preserves gate precision) ---
    gates_wide = jnp.dot(sparse, emat_ref[...], preferred_element_type=f32)

    # ---- predict layer; rmat (expert reduce) folded into wp1_tiled ------------
    gated = (h2 * gates_wide).astype(MXU_DTYPE)              # multiply in f32, then cast
    hp = jnp.dot(gated, wp1t_ref[...], preferred_element_type=f32)
    hp = jnp.maximum(hp + bp1_ref[...], 0.0).astype(MXU_DTYPE)
    y_ref[...] = jnp.dot(hp, wp2_ref[...],
                         preferred_element_type=f32) + bp2_ref[...]

    # ---- per-tile expert importance (aux loss), lane-dense (8, OPAD) tile -----
    # Mask off batch-padding rows so the batch sum is exact.
    row = jax.lax.broadcasted_iota(jnp.int32, sparse.shape, 0)
    limit = batch - pl.program_id(0) * tile_b
    imp_row = jnp.sum(jnp.where(row < limit, sparse, 0.0),
                      axis=0, keepdims=True)                 # [1, K] f32
    imp = jnp.dot(imp_row, place_ref[...],
                  preferred_element_type=f32)                # [1, OPAD], lanes 0..K-1
    imp_ref[...] = jnp.broadcast_to(imp, (8, imp.shape[1]))


# ----------------------------------------------------------------------------
# Wrapper
# ----------------------------------------------------------------------------
def _round_up(x, m):
    return (x + m - 1) // m * m


def fused_forward(inp, p, select_experts, batch):
    """inp: [B, F+Gin] bf16 (x_emb ++ sql_emb). Returns (y_pad[B,OPAD], importance[K])."""
    B, FIN = inp.shape
    K = p["wg2"].shape[1]
    KH = p["emat"].shape[1]

    # Big batch tile (amortizes per-step overhead, fills the MXU M dim) while
    # keeping nb >= 2 whenever B allows it so v7x's 2nd TensorCore is used.
    TB = min(1024, _round_up(pl.cdiv(B, 2), 8))
    Bp = _round_up(B, TB)
    if Bp != B:
        inp = jnp.pad(inp, ((0, Bp - B), (0, 0)))
    nb = Bp // TB

    kernel = functools.partial(fused_moe_kernel, kh=KH,
                               select_experts=select_experts,
                               tile_b=TB, batch=batch)

    args = (inp,
            p["w_in"], p["b_in"], p["wg2"], p["bg2"],
            p["w2"], p["b2"], p["emat"],
            p["wp1t"], p["bp1"], p["wp2"], p["bp2"],
            p["place"])

    def rep_spec(shape):                 # whole-array block, grid-invariant weight
        nd = len(shape)
        return pl.BlockSpec(shape, lambda i, _nd=nd: (0,) * _nd)

    in_specs = ([pl.BlockSpec((TB, FIN), lambda i: (i, 0))]
                + [rep_spec(a.shape) for a in args[1:]])
    out_specs = (pl.BlockSpec((TB, OPAD), lambda i: (i, 0)),
                 pl.BlockSpec((8, OPAD), lambda i: (i, 0)))
    out_shape = (jax.ShapeDtypeStruct((Bp, OPAD), jnp.float32),
                 jax.ShapeDtypeStruct((nb * 8, OPAD), jnp.float32))

    y_pad, imp_part = pl.pallas_call(
        kernel,
        grid=(nb,),
        in_specs=in_specs,
        out_specs=out_specs,
        out_shape=out_shape,
        compiler_params=pltpu.CompilerParams(
            dimension_semantics=("parallel",)),   # megacore split on v7x
    )(*args)

    importance = imp_part.reshape(nb, 8, OPAD)[:, 0, :K].sum(axis=0)   # [K]
    return y_pad[:B], importance


@functools.partial(jax.jit, static_argnames=("select_experts", "out_size"))
def forward(params, x_ids, sql_ids, *, select_experts, out_size=1):
    """Mirrors VerticalMoE_Predict_Sams.forward; returns (y[B], loss[1])."""
    B = x_ids.shape[0]
    # Embedding lookups (gather) stay in XLA glue; tables are bf16 so there is
    # no extra cast pass.  The concat feeds the merged block-diag first layer
    # and typically fuses with the gathers.
    # TODO(synk): move gathers in-kernel via PrefetchScalarGridSpec ids +
    #             pl.Element row-gather BlockSpecs if glue ops show in traces.
    x_emb = params["input_emb"][x_ids].reshape(B, -1)     # [B, nfield*data_nemb] bf16
    sql_emb = params["sql_emb"][sql_ids].reshape(B, -1)   # [B, nfield*sql_nemb]  bf16
    inp = jnp.concatenate([x_emb, sql_emb], axis=1)       # [B, F+Gin] bf16

    y_pad, importance = fused_forward(inp, params, select_experts, B)

    # SparseMoE load-balancing aux loss: cv^2 of expert importance.
    # Unbiased variance (ddof=1) matches torch Tensor.var() default.
    cv2 = jnp.var(importance, ddof=1) / (jnp.mean(importance) ** 2 + 1e-10)

    y = y_pad[:, :out_size]
    y = y[:, 0] if out_size == 1 else y                    # torch .squeeze(-1)
    return y, jnp.reshape(cv2, (1,))


# ----------------------------------------------------------------------------
# Deterministic parameter initialization (BN folded, weights packed host-side)
# ----------------------------------------------------------------------------
def _xavier(key, shape, fan_in, fan_out):
    limit = (6.0 / (fan_in + fan_out)) ** 0.5
    return jax.random.uniform(key, shape, jnp.float32, -limit, limit)


def init_params(key, *, nfield, nfeat, data_nemb, sql_nemb, K, H, out_size):
    assert out_size <= OPAD
    col_card = nfield + nfeat + 1
    F = nfield * data_nemb          # expert input size
    Gin = nfield * sql_nemb         # gate input size
    KH = K * H
    ks = jax.random.split(key, 16)
    eps = 1e-5

    def bn_fold(kg, kb, n):
        gamma = 1.0 + 0.1 * jax.random.normal(kg, (n,), jnp.float32)
        beta = 0.1 * jax.random.normal(kb, (n,), jnp.float32)
        mean = jnp.zeros((n,), jnp.float32)       # eval-mode running stats
        var = jnp.ones((n,), jnp.float32)
        scale = gamma / jnp.sqrt(var + eps)
        shift = beta - mean * scale
        return scale, shift

    p = {}
    # Embedding tables (xavier_uniform), stored bf16 -> MXU-ready gathers.
    p["sql_emb"] = _xavier(ks[0], (col_card, sql_nemb),
                           col_card, sql_nemb).astype(MXU_DTYPE)
    p["input_emb"] = _xavier(ks[1], (nfeat, data_nemb),
                             nfeat, data_nemb).astype(MXU_DTYPE)

    # Gate network (SparseVerticalGate): Linear(Gin,H) -> ReLU -> Linear(H,K).
    wg1 = _xavier(ks[2], (Gin, H), Gin, H)
    bg1 = jnp.zeros((1, H), jnp.float32)
    p["wg2"] = _xavier(ks[3], (H, K), H, K).astype(MXU_DTYPE)
    p["bg2"] = jnp.zeros((1, K), jnp.float32)

    # Experts: fc1 [K,F,H], fc2 [K,H,H]; fold eval-mode BN, then pack.
    w1 = _xavier(ks[4], (K, F, H), F, H)
    b1 = 0.01 * jax.random.normal(ks[5], (K, H), jnp.float32)
    w2 = _xavier(ks[6], (K, H, H), H, H)
    b2 = 0.01 * jax.random.normal(ks[7], (K, H), jnp.float32)
    s1, t1 = bn_fold(ks[8], ks[9], KH)
    s2, t2 = bn_fold(ks[10], ks[11], KH)
    s1, t1 = s1.reshape(K, H), t1.reshape(K, H)
    s2, t2 = s2.reshape(K, H), t2.reshape(K, H)
    w1f, b1f = w1 * s1[:, None, :], b1 * s1 + t1      # BN fold: w'=w*s, b'=b*s+t
    w2f, b2f = w2 * s2[:, None, :], b2 * s2 + t2

    # Merged first-layer weight: block-diag [[expert fc1, 0], [0, gate fc1]].
    w1_packed = jnp.transpose(w1f, (1, 0, 2)).reshape(F, KH)   # [F, K*H]
    w_in = jnp.zeros((F + Gin, KH + H), jnp.float32)
    w_in = w_in.at[:F, :KH].set(w1_packed)
    w_in = w_in.at[F:, KH:].set(wg1)
    p["w_in"] = w_in.astype(MXU_DTYPE)
    p["b_in"] = jnp.concatenate([b1f.reshape(1, KH), bg1], axis=1)   # [1, KH+H]

    # Expert fc2 packed block-diagonal [K*H, K*H].
    w2blk = jnp.zeros((KH, KH), jnp.float32)
    for e in range(K):
        w2blk = w2blk.at[e * H:(e + 1) * H, e * H:(e + 1) * H].set(w2f[e])
    p["w2"] = w2blk.astype(MXU_DTYPE)
    p["b2"] = b2f.reshape(1, KH)

    # Gate-expand helper (exact 0/1; kept f32 so sparse gates stay f32 on MXU).
    p["emat"] = jnp.repeat(jnp.eye(K, dtype=jnp.float32), H, axis=1)   # [K, K*H]

    # Predict layer: Linear(H,H) -> BN(folded) -> ReLU -> Dropout -> Linear(H,out).
    # The expert-reduce matrix rmat is folded in: wp1t = rmat @ wp1f = tile(wp1f, K).
    wp1 = _xavier(ks[12], (H, H), H, H)
    sp, tp = bn_fold(ks[13], ks[14], H)
    wp1f = wp1 * sp[None, :]
    p["wp1t"] = jnp.tile(wp1f, (K, 1)).astype(MXU_DTYPE)       # [K*H, H]
    p["bp1"] = tp.reshape(1, H)                                 # bias was 0: b'=t
    wp2 = _xavier(ks[15], (H, out_size), H, out_size)
    p["wp2"] = jnp.pad(wp2, ((0, 0), (0, OPAD - out_size))).astype(MXU_DTYPE)
    p["bp2"] = jnp.zeros((1, OPAD), jnp.float32)                # lane-dense padded

    # Importance lane-placement helper (eye(K) padded to OPAD lanes, exact 0/1).
    p["place"] = jnp.pad(jnp.eye(K, dtype=jnp.float32), ((0, 0), (0, OPAD - K)))
    return p


# ----------------------------------------------------------------------------
if __name__ == "__main__":
    # Small args consistent with the module.
    B = 8
    nfield, nfeat = 4, 64
    data_nemb, sql_nemb = 8, 8
    K, C = 4, 2                      # num_experts, select_experts
    H = 32                           # hid_layer_len  (K*H = 128 -> lane dense)
    out_size = 1
    col_card = nfield + nfeat + 1

    key = jax.random.PRNGKey(0)
    k_param, k_x, k_sql = jax.random.split(key, 3)
    params = init_params(k_param, nfield=nfield, nfeat=nfeat,
                         data_nemb=data_nemb, sql_nemb=sql_nemb,
                         K=K, H=H, out_size=out_size)

    x_ids = jax.random.randint(k_x, (B, nfield), 0, nfeat, dtype=jnp.int32)
    sql_ids = jax.random.randint(k_sql, (B, nfield), 0, col_card, dtype=jnp.int32)

    y, loss = forward(params, x_ids, sql_ids,
                      select_experts=C, out_size=out_size)
    y, loss = jax.block_until_ready((y, loss))

    assert y.shape == (B,) and loss.shape == (1,)
    assert jnp.all(jnp.isfinite(y)) and jnp.all(jnp.isfinite(loss))
    print("KERNEL_OK")
</pallas_src>

<mosaic_0001>
module attributes {stable_mosaic.version = 11 : i64} {
  func.func @fused_moe_kernel(%arg0: i32, %arg1: memref<8x64xbf16, #tpu.memory_space<vmem>>, %arg2: memref<64x160xbf16, #tpu.memory_space<vmem>>, %arg3: memref<1x160xf32, #tpu.memory_space<vmem>>, %arg4: memref<32x4xbf16, #tpu.memory_space<vmem>>, %arg5: memref<1x4xf32, #tpu.memory_space<vmem>>, %arg6: memref<128x128xbf16, #tpu.memory_space<vmem>>, %arg7: memref<1x128xf32, #tpu.memory_space<vmem>>, %arg8: memref<4x128xf32, #tpu.memory_space<vmem>>, %arg9: memref<128x32xbf16, #tpu.memory_space<vmem>>, %arg10: memref<1x32xf32, #tpu.memory_space<vmem>>, %arg11: memref<32x128xbf16, #tpu.memory_space<vmem>>, %arg12: memref<1x128xf32, #tpu.memory_space<vmem>>, %arg13: memref<4x128xf32, #tpu.memory_space<vmem>>, %arg14: memref<8x128xf32, #tpu.memory_space<vmem>>, %arg15: memref<8x128xf32, #tpu.memory_space<vmem>>) attributes {dimension_semantics = [#tpu.dimension_semantics<parallel>], iteration_bounds = array<i64: 1>, scalar_prefetch = 0 : i64, scratch_operands = 0 : i64, tpu.core_type = #tpu.core_type<tc>, window_params = [{transform_indices = @transform_0, window_bounds = array<i64: 8, 64>}, {pipeline_mode = #tpu.pipeline_mode<synchronous>, transform_indices = @transform_1, window_bounds = array<i64: 64, 160>}, {pipeline_mode = #tpu.pipeline_mode<synchronous>, transform_indices = @transform_2, window_bounds = array<i64: 1, 160>}, {pipeline_mode = #tpu.pipeline_mode<synchronous>, transform_indices = @transform_3, window_bounds = array<i64: 32, 4>}, {pipeline_mode = #tpu.pipeline_mode<synchronous>, transform_indices = @transform_4, window_bounds = array<i64: 1, 4>}, {pipeline_mode = #tpu.pipeline_mode<synchronous>, transform_indices = @transform_5, window_bounds = array<i64: 128, 128>}, {pipeline_mode = #tpu.pipeline_mode<synchronous>, transform_indices = @transform_6, window_bounds = array<i64: 1, 128>}, {pipeline_mode = #tpu.pipeline_mode<synchronous>, transform_indices = @transform_7, window_bounds = array<i64: 4, 128>}, {pipeline_mode = #tpu.pipeline_mode<synchronous>, transform_indices = @transform_8, window_bounds = array<i64: 128, 32>}, {pipeline_mode = #tpu.pipeline_mode<synchronous>, transform_indices = @transform_9, window_bounds = array<i64: 1, 32>}, {pipeline_mode = #tpu.pipeline_mode<synchronous>, transform_indices = @transform_10, window_bounds = array<i64: 32, 128>}, {pipeline_mode = #tpu.pipeline_mode<synchronous>, transform_indices = @transform_11, window_bounds = array<i64: 1, 128>}, {pipeline_mode = #tpu.pipeline_mode<synchronous>, transform_indices = @transform_12, window_bounds = array<i64: 4, 128>}, {transform_indices = @transform_13, window_bounds = array<i64: 8, 128>}, {transform_indices = @transform_14, window_bounds = array<i64: 8, 128>}]} {
    %c0 = arith.constant 0 : index
    %c0_0 = arith.constant 0 : index
    %0 = vector.load %arg1[%c0, %c0_0] : memref<8x64xbf16, #tpu.memory_space<vmem>>, vector<8x64xbf16>
    %c0_1 = arith.constant 0 : index
    %c0_2 = arith.constant 0 : index
    %1 = vector.load %arg2[%c0_1, %c0_2] : memref<64x160xbf16, #tpu.memory_space<vmem>>, vector<64x160xbf16>
    %cst = arith.constant dense<0.000000e+00> : vector<8x160xf32>
    %2 = tpu.matmul %0, %1, %cst {dimension_numbers = #tpu.dot_dimension_numbers<[1], [0], [0], [1], [0, 0, 1, 1], [], []>} : vector<8x64xbf16>, vector<64x160xbf16>, vector<8x160xf32> -> vector<8x160xf32>
    %c0_3 = arith.constant 0 : index
    %c0_4 = arith.constant 0 : index
    %3 = vector.load %arg3[%c0_3, %c0_4] : memref<1x160xf32, #tpu.memory_space<vmem>>, vector<1x160xf32>
    %4 = vector.broadcast %3 : vector<1x160xf32> to vector<8x160xf32>
    %5 = arith.addf %2, %4 : vector<8x160xf32>
    %cst_5 = arith.constant 0.000000e+00 : f32
    %6 = vector.broadcast %cst_5 : f32 to vector<8x160xf32>
    %7 = arith.maximumf %5, %6 : vector<8x160xf32>
    %8 = vector.extract_strided_slice %7 {offsets = [0, 0], sizes = [8, 128], strides = [1, 1]} : vector<8x160xf32> to vector<8x128xf32>
    %9 = arith.truncf %8 : vector<8x128xf32> to vector<8x128xbf16>
    %10 = vector.extract_strided_slice %7 {offsets = [0, 128], sizes = [8, 32], strides = [1, 1]} : vector<8x160xf32> to vector<8x32xf32>
    %11 = arith.truncf %10 : vector<8x32xf32> to vector<8x32xbf16>
    %c0_6 = arith.constant 0 : index
    %c0_7 = arith.constant 0 : index
    %12 = vector.load %arg4[%c0_6, %c0_7] : memref<32x4xbf16, #tpu.memory_space<vmem>>, vector<32x4xbf16>
    %cst_8 = arith.constant dense<0.000000e+00> : vector<8x4xf32>
    %13 = tpu.matmul %11, %12, %cst_8 {dimension_numbers = #tpu.dot_dimension_numbers<[1], [0], [0], [1], [0, 0, 1, 1], [], []>} : vector<8x32xbf16>, vector<32x4xbf16>, vector<8x4xf32> -> vector<8x4xf32>
    %c0_9 = arith.constant 0 : index
    %c0_10 = arith.constant 0 : index
    %14 = vector.load %arg5[%c0_9, %c0_10] : memref<1x4xf32, #tpu.memory_space<vmem>>, vector<1x4xf32>
    %15 = vector.broadcast %14 : vector<1x4xf32> to vector<8x4xf32>
    %16 = arith.addf %13, %15 : vector<8x4xf32>
    %cst_11 = arith.constant dense<0xFF800000> : vector<8xf32>
    %17 = vector.multi_reduction <maximumf>, %16, %cst_11 [1] : vector<8x4xf32> to vector<8xf32>
    %18 = vector.shape_cast %17 : vector<8xf32> to vector<8x1xf32>
    %19 = vector.broadcast %18 : vector<8x1xf32> to vector<8x4xf32>
    %20 = arith.subf %16, %19 : vector<8x4xf32>
    %21 = math.exp %20 : vector<8x4xf32>
    %cst_12 = arith.constant dense<0.000000e+00> : vector<8xf32>
    %22 = vector.multi_reduction <add>, %21, %cst_12 [1] : vector<8x4xf32> to vector<8xf32>
    %23 = vector.shape_cast %22 : vector<8xf32> to vector<8x1xf32>
    %24 = tpu.reciprocal %23 {approx = true} : vector<8x1xf32> -> vector<8x1xf32>
    %25 = vector.broadcast %24 : vector<8x1xf32> to vector<8x4xf32>
    %26 = arith.mulf %21, %25 : vector<8x4xf32>
    %cst_13 = arith.constant 0.000000e+00 : f32
    %27 = vector.broadcast %cst_13 : f32 to vector<8x4xf32>
    %cst_14 = arith.constant dense<0xFF800000> : vector<8xf32>
    %28 = vector.multi_reduction <maximumf>, %26, %cst_14 [1] : vector<8x4xf32> to vector<8xf32>
    %29 = vector.shape_cast %28 : vector<8xf32> to vector<8x1xf32>
    %30 = vector.broadcast %29 : vector<8x1xf32> to vector<8x4xf32>
    %31 = arith.cmpf oge, %26, %30 : vector<8x4xf32>
    %32 = arith.extui %31 : vector<8x4xi1> to vector<8x4xi32>
    %33 = arith.sitofp %32 : vector<8x4xi32> to vector<8x4xf32>
    %34 = arith.maximumf %27, %33 : vector<8x4xf32>
    %cst_15 = arith.constant -1.000000e+30 : f32
    %35 = vector.broadcast %cst_15 : f32 to vector<8x4xf32>
    %36 = arith.select %31, %35, %26 : vector<8x4xi1>, vector<8x4xf32>
    %cst_16 = arith.constant dense<0xFF800000> : vector<8xf32>
    %37 = vector.multi_reduction <maximumf>, %36, %cst_16 [1] : vector<8x4xf32> to vector<8xf32>
    %38 = vector.shape_cast %37 : vector<8xf32> to vector<8x1xf32>
    %39 = vector.broadcast %38 : vector<8x1xf32> to vector<8x4xf32>
    %40 = arith.cmpf oge, %36, %39 : vector<8x4xf32>
    %41 = arith.extui %40 : vector<8x4xi1> to vector<8x4xi32>
    %42 = arith.sitofp %41 : vector<8x4xi32> to vector<8x4xf32>
    %43 = arith.maximumf %34, %42 : vector<8x4xf32>
    %44 = arith.mulf %26, %43 : vector<8x4xf32>
    %c0_17 = arith.constant 0 : index
    %c0_18 = arith.constant 0 : index
    %45 = vector.load %arg6[%c0_17, %c0_18] : memref<128x128xbf16, #tpu.memory_space<vmem>>, vector<128x128xbf16>
    %cst_19 = arith.constant dense<0.000000e+00> : vector<8x128xf32>
    %46 = tpu.matmul %9, %45, %cst_19 {dimension_numbers = #tpu.dot_dimension_numbers<[1], [0], [0], [1], [0, 0, 1, 1], [], []>} : vector<8x128xbf16>, vector<128x128xbf16>, vector<8x128xf32> -> vector<8x128xf32>
    %c0_20 = arith.constant 0 : index
    %c0_21 = arith.constant 0 : index
    %47 = vector.load %arg7[%c0_20, %c0_21] : memref<1x128xf32, #tpu.memory_space<vmem>>, vector<1x128xf32>
    %48 = vector.broadcast %47 : vector<1x128xf32> to vector<8x128xf32>
    %49 = arith.addf %46, %48 : vector<8x128xf32>
    %cst_22 = arith.constant 0.000000e+00 : f32
    %50 = vector.broadcast %cst_22 : f32 to vector<8x128xf32>
    %51 = arith.maximumf %49, %50 : vector<8x128xf32>
    %c0_23 = arith.constant 0 : index
    %c0_24 = arith.constant 0 : index
    %52 = vector.load %arg8[%c0_23, %c0_24] : memref<4x128xf32, #tpu.memory_space<vmem>>, vector<4x128xf32>
    %cst_25 = arith.constant dense<0.000000e+00> : vector<8x128xf32>
    %53 = tpu.matmul %44, %52, %cst_25 {dimension_numbers = #tpu.dot_dimension_numbers<[1], [0], [0], [1], [0, 0, 1, 1], [], []>} : vector<8x4xf32>, vector<4x128xf32>, vector<8x128xf32> -> vector<8x128xf32>
    %54 = arith.mulf %51, %53 : vector<8x128xf32>
    %55 = arith.truncf %54 : vector<8x128xf32> to vector<8x128xbf16>
    %c0_26 = arith.constant 0 : index
    %c0_27 = arith.constant 0 : index
    %56 = vector.load %arg9[%c0_26, %c0_27] : memref<128x32xbf16, #tpu.memory_space<vmem>>, vector<128x32xbf16>
    %cst_28 = arith.constant dense<0.000000e+00> : vector<8x32xf32>
    %57 = tpu.matmul %55, %56, %cst_28 {dimension_numbers = #tpu.dot_dimension_numbers<[1], [0], [0], [1], [0, 0, 1, 1], [], []>} : vector<8x128xbf16>, vector<128x32xbf16>, vector<8x32xf32> -> vector<8x32xf32>
    %c0_29 = arith.constant 0 : index
    %c0_30 = arith.constant 0 : index
    %58 = vector.load %arg10[%c0_29, %c0_30] : memref<1x32xf32, #tpu.memory_space<vmem>>, vector<1x32xf32>
    %59 = vector.broadcast %58 : vector<1x32xf32> to vector<8x32xf32>
    %60 = arith.addf %57, %59 : vector<8x32xf32>
    %cst_31 = arith.constant 0.000000e+00 : f32
    %61 = vector.broadcast %cst_31 : f32 to vector<8x32xf32>
    %62 = arith.maximumf %60, %61 : vector<8x32xf32>
    %63 = arith.truncf %62 : vector<8x32xf32> to vector<8x32xbf16>
    %c0_32 = arith.constant 0 : index
    %c0_33 = arith.constant 0 : index
    %64 = vector.load %arg11[%c0_32, %c0_33] : memref<32x128xbf16, #tpu.memory_space<vmem>>, vector<32x128xbf16>
    %cst_34 = arith.constant dense<0.000000e+00> : vector<8x128xf32>
    %65 = tpu.matmul %63, %64, %cst_34 {dimension_numbers = #tpu.dot_dimension_numbers<[1], [0], [0], [1], [0, 0, 1, 1], [], []>} : vector<8x32xbf16>, vector<32x128xbf16>, vector<8x128xf32> -> vector<8x128xf32>
    %c0_35 = arith.constant 0 : index
    %c0_36 = arith.constant 0 : index
    %66 = vector.load %arg12[%c0_35, %c0_36] : memref<1x128xf32, #tpu.memory_space<vmem>>, vector<1x128xf32>
    %67 = vector.broadcast %66 : vector<1x128xf32> to vector<8x128xf32>
    %68 = arith.addf %65, %67 : vector<8x128xf32>
    %c0_37 = arith.constant 0 : index
    %c0_38 = arith.constant 0 : index
    %69 = vector.load %arg14[%c0_37, %c0_38] : memref<8x128xf32, #tpu.memory_space<vmem>>, vector<8x128xf32>
    tpu.vector_store %arg14[%c0_37, %c0_38], %68 {strides = array<i32>} : memref<8x128xf32, #tpu.memory_space<vmem>>, vector<8x128xf32>,
    %70 = tpu.iota {dimensions = array<i32: 0>} : vector<8x4xi32>
    %c8_i32 = arith.constant 8 : i32
    %71 = arith.muli %arg0, %c8_i32 : i32
    %c8_i32_39 = arith.constant 8 : i32
    %72 = arith.subi %c8_i32_39, %71 : i32
    %73 = vector.broadcast %72 : i32 to vector<8x4xi32>
    %74 = arith.cmpi slt, %70, %73 : vector<8x4xi32>
    %cst_40 = arith.constant 0.000000e+00 : f32
    %75 = vector.broadcast %cst_40 : f32 to vector<8x4xf32>
    %76 = arith.select %74, %44, %75 : vector<8x4xi1>, vector<8x4xf32>
    %cst_41 = arith.constant dense<0.000000e+00> : vector<4xf32>
    %77 = vector.multi_reduction <add>, %76, %cst_41 [0] : vector<8x4xf32> to vector<4xf32>
    %78 = vector.shape_cast %77 : vector<4xf32> to vector<1x4xf32>
    %c0_42 = arith.constant 0 : index
    %c0_43 = arith.constant 0 : index
    %79 = vector.load %arg13[%c0_42, %c0_43] : memref<4x128xf32, #tpu.memory_space<vmem>>, vector<4x128xf32>
    %cst_44 = arith.constant dense<0.000000e+00> : vector<1x128xf32>
    %80 = tpu.matmul %78, %79, %cst_44 {dimension_numbers = #tpu.dot_dimension_numbers<[1], [0], [0], [1], [0, 0, 1, 1], [], []>} : vector<1x4xf32>, vector<4x128xf32>, vector<1x128xf32> -> vector<1x128xf32>
    %81 = vector.shape_cast %80 : vector<1x128xf32> to vector<1x128xf32>
    %82 = vector.broadcast %81 : vector<1x128xf32> to vector<8x128xf32>
    %c0_45 = arith.constant 0 : index
    %c0_46 = arith.constant 0 : index
    %83 = vector.load %arg15[%c0_45, %c0_46] : memref<8x128xf32, #tpu.memory_space<vmem>>, vector<8x128xf32>
    tpu.vector_store %arg15[%c0_45, %c0_46], %82 {strides = array<i32>} : memref<8x128xf32, #tpu.memory_space<vmem>>, vector<8x128xf32>,
    return
  }
  func.func @transform_0(%arg0: i32) -> (i32, i32) {
    %c0_i32 = arith.constant 0 : i32
    %c0_i32_0 = arith.constant 0 : i32
    return %arg0, %c0_i32 : i32, i32
  }
  func.func @transform_1(%arg0: i32) -> (i32, i32) {
    %c0_i32 = arith.constant 0 : i32
    %c0_i32_0 = arith.constant 0 : i32
    %c0_i32_1 = arith.constant 0 : i32
    return %c0_i32, %c0_i32_0 : i32, i32
  }
  func.func @transform_2(%arg0: i32) -> (i32, i32) {
    %c0_i32 = arith.constant 0 : i32
    %c0_i32_0 = arith.constant 0 : i32
    %c0_i32_1 = arith.constant 0 : i32
    return %c0_i32, %c0_i32_0 : i32, i32
  }
  func.func @transform_3(%arg0: i32) -> (i32, i32) {
    %c0_i32 = arith.constant 0 : i32
    %c0_i32_0 = arith.constant 0 : i32
    %c0_i32_1 = arith.constant 0 : i32
    return %c0_i32, %c0_i32_0 : i32, i32
  }
  func.func @transform_4(%arg0: i32) -> (i32, i32) {
    %c0_i32 = arith.constant 0 : i32
    %c0_i32_0 = arith.constant 0 : i32
    %c0_i32_1 = arith.constant 0 : i32
    return %c0_i32, %c0_i32_0 : i32, i32
  }
  func.func @transform_5(%arg0: i32) -> (i32, i32) {
    %c0_i32 = arith.constant 0 : i32
    %c0_i32_0 = arith.constant 0 : i32
    %c0_i32_1 = arith.constant 0 : i32
    return %c0_i32, %c0_i32_0 : i32, i32
  }
  func.func @transform_6(%arg0: i32) -> (i32, i32) {
    %c0_i32 = arith.constant 0 : i32
    %c0_i32_0 = arith.constant 0 : i32
    %c0_i32_1 = arith.constant 0 : i32
    return %c0_i32, %c0_i32_0 : i32, i32
  }
  func.func @transform_7(%arg0: i32) -> (i32, i32) {
    %c0_i32 = arith.constant 0 : i32
    %c0_i32_0 = arith.constant 0 : i32
    %c0_i32_1 = arith.constant 0 : i32
    return %c0_i32, %c0_i32_0 : i32, i32
  }
  func.func @transform_8(%arg0: i32) -> (i32, i32) {
    %c0_i32 = arith.constant 0 : i32
    %c0_i32_0 = arith.constant 0 : i32
    %c0_i32_1 = arith.constant 0 : i32
    return %c0_i32, %c0_i32_0 : i32, i32
  }
  func.func @transform_9(%arg0: i32) -> (i32, i32) {
    %c0_i32 = arith.constant 0 : i32
    %c0_i32_0 = arith.constant 0 : i32
    %c0_i32_1 = arith.constant 0 : i32
    return %c0_i32, %c0_i32_0 : i32, i32
  }
  func.func @transform_10(%arg0: i32) -> (i32, i32) {
    %c0_i32 = arith.constant 0 : i32
    %c0_i32_0 = arith.constant 0 : i32
    %c0_i32_1 = arith.constant 0 : i32
    return %c0_i32, %c0_i32_0 : i32, i32
  }
  func.func @transform_11(%arg0: i32) -> (i32, i32) {
    %c0_i32 = arith.constant 0 : i32
    %c0_i32_0 = arith.constant 0 : i32
    %c0_i32_1 = arith.constant 0 : i32
    return %c0_i32, %c0_i32_0 : i32, i32
  }
  func.func @transform_12(%arg0: i32) -> (i32, i32) {
    %c0_i32 = arith.constant 0 : i32
    %c0_i32_0 = arith.constant 0 : i32
    %c0_i32_1 = arith.constant 0 : i32
    return %c0_i32, %c0_i32_0 : i32, i32
  }
  func.func @transform_13(%arg0: i32) -> (i32, i32) {
    %c0_i32 = arith.constant 0 : i32
    %c0_i32_0 = arith.constant 0 : i32
    return %arg0, %c0_i32 : i32, i32
  }
  func.func @transform_14(%arg0: i32) -> (i32, i32) {
    %c0_i32 = arith.constant 0 : i32
    %c0_i32_0 = arith.constant 0 : i32
    return %arg0, %c0_i32 : i32, i32
  }
}

</mosaic_0001>

<bundles_post_ra>
// kernel: forward.1
= control target key start
LH: loop header
LB: loop body
LE: loop exit
PB: predicated region body
PF: predicated region fallthrough
CT: control target
= control target key end

     0   :  { %vm102_vm0 = vcmask 523264   ;;  %vm156_vm1 = vcmask 261120   ;;  %vm173_vm2 = vcmask 31744   ;;  %vm287_vm3 = vcmask 1043456   ;;  %s876_s1 = inlined_call_operand.vmem [shape: bf16[64,160], index: 1, kind: input, shape index: {}]   ;;  %s877_s0 = inlined_call_operand.vmem [shape: bf16[8,64], index: 0, kind: input, shape index: {}]   ;;  %s878_s4 = inlined_call_operand.vmem [shape: f32[1,4], index: 4, kind: input, shape index: {}]   ;;  %s879_s3 = inlined_call_operand.vmem [shape: bf16[32,4], index: 3, kind: input, shape index: {}]   ;;  %s880_s2 = inlined_call_operand.vmem [shape: f32[1,160], index: 2, kind: input, shape index: {}]   ;;  %s881_s5 = inlined_call_operand.vmem [shape: bf16[128,128], index: 5, kind: input, shape index: {}]   ;;  %s882_s7 = inlined_call_operand.vmem [shape: f32[4,128], index: 7, kind: input, shape index: {}]   ;;  %s883_s6 = inlined_call_operand.vmem [shape: f32[1,128], index: 6, kind: input, shape index: {}]   ;;  %s884_s12 = inlined_call_operand.vmem [shape: f32[4,128], index: 12, kind: input, shape index: {}]   ;;  %s885_s8 = inlined_call_operand.vmem [shape: bf16[128,32], index: 8, kind: input, shape index: {}]   ;;  %s886_s9 = inlined_call_operand.vmem [shape: f32[1,32], index: 9, kind: input, shape index: {}]   ;;  %s887_s10 = inlined_call_operand.vmem [shape: bf16[32,128], index: 10, kind: input, shape index: {}]   ;;  %s888_s11 = inlined_call_operand.vmem [shape: f32[1,128], index: 11, kind: input, shape index: {}]   ;;  %s889_s14 = inlined_call_operand.vmem [shape: f32[8,128], index: 14, kind: output, shape index: {1}]   ;;  %s890_s13 = inlined_call_operand.vmem [shape: f32[8,128], index: 13, kind: output, shape index: {0}]  }
   0x1   :  { %v612_v0 = vld [vmem:[%s876_s1 + $0x34] sm:$0xf]  ;;  %v512_v1 = vld [vmem:[%s876_s1 + $0x38] sm:$0xf0]  ;;  %v610_v2 = vld [vmem:[%s876_s1 + $0x24] sm:$0xf] }
   0x2   :  { %v515_v3 = vor.u32 %v612_v0, %v512_v1  ;;  %v504_v4 = vld [vmem:[%s876_s1 + $0x28] sm:$0xf0]  ;;  %v608_v6 = vld [vmem:[%s876_s1 + $0x14] sm:$0xf]  ;;  %v496_v7 = vld [vmem:[%s876_s1 + $0x18] sm:$0xf0] }
   0x3   :  { %v507_v5 = vor.u32 %v610_v2, %v504_v4  ;;  %v499_v8 = vor.u32 %v608_v6, %v496_v7  ;;  %v606_v9 = vld [vmem:[%s876_s1 + $0x4] sm:$0xf]  ;;  %v488_v10 = vld [vmem:[%s876_s1 + $0x8] sm:$0xf0]  ;;  %v47_v12 = vld [vmem:[%s877_s0] sm:$0xf] }
   0x4   :  { %123 = vmatpush.bf16.msra.mxu1 %v515_v3  ;;  %v491_v11 = vor.u32 %v606_v9, %v488_v10  ;;  %v615_v13 = vld [vmem:[%s879_s3 + $0x8] sm:$0xff]  ;;  %v614_v14 = vld [vmem:[%s879_s3] sm:$0xff]  ;;  %v510_v32 = vld [vmem:[%s876_s1 + $0x30] sm:$0xf]  ;;  %v643_v6 = vmov 0.0  }
   0x5   :  { %166 = vmatpush.bf16.msra.mxu2 %v615_v13  ;;  %v756_v15 = vld [vmem:[%s880_s2] sm:$0x3]  ;;  %v613_v33 = vld [vmem:[%s876_s1 + $0x34] sm:$0xf0]  ;;  %v611_v36 = vld [vmem:[%s876_s1 + $0x24] sm:$0xf0] }
   0x6   :  { %v59_v16 = vperm.slane %v756_v15, 1  ;;  %v635_v22 = vld [vmem:[%s878_s4] ss:$0 sm:$0xff]  ;;  %v511_v35 = vor.u32 %v613_v33, %v510_v32  ;;  %v494_v38 = vld [vmem:[%s876_s1 + $0x10] sm:$0xf]  ;;  %v623_v48 = vld [vmem:[%s881_s5 + $0x38] sm:$0xff] }
   0x7   :  { %v502_v34 = vld [vmem:[%s876_s1 + $0x20] sm:$0xf]  ;;  %v609_v39 = vld [vmem:[%s876_s1 + $0x14] sm:$0xf0]  ;;  %v607_v42 = vld [vmem:[%s876_s1 + $0x4] sm:$0xf0]  ;;  %269 = vmatpush.bf16.msra.mxu3 %v623_v48 }
   0x8   :  { %124 = vmatpush.bf16.msra.mxu1 %v507_v5  ;;  %110 = vmatpush.bf16.msra.mxu0 %v511_v35  ;;  %v503_v37 = vor.u32 %v611_v36, %v502_v34  ;;  %v495_v40 = vor.u32 %v609_v39, %v494_v38  ;;  %v486_v41 = vld [vmem:[%s876_s1] sm:$0xf]  ;;  %v622_v49 = vld [vmem:[%s881_s5 + $0x30] sm:$0xff]  ;;  %v621_v51 = vld [vmem:[%s881_s5 + $0x28] sm:$0xff]  ;;  %v58_v55 = vperm.slane %v756_v15, 0 }
   0x9   :  { %167 = vmatpush.bf16.msra.mxu2 %v614_v14  ;;  %v487_v43 = vor.u32 %v607_v42, %v486_v41  ;;  %v283_v50 = vld [vmem:[%s882_s7] sm:$0xf]  ;;  %v619_v53 = vld [vmem:[%s881_s5 + $0x18] sm:$0xff]  ;;  %v618_v54 = vld [vmem:[%s881_s5 + $0x10] sm:$0xff] }
   0xa   :  { %v620_v52 = vld [vmem:[%s881_s5 + $0x20] sm:$0xff]  ;;  %v617_v56 = vld [vmem:[%s881_s5 + $0x8] sm:$0xff]  ;;  %v631_v3 = vld [vmem:[%s885_s8 + $0x38] sm:$0xff] }
   0xb   :  { %270 = vmatpush.bf16.msra.mxu3 %v622_v49  ;;  %v616_v59 = vld [vmem:[%s881_s5] sm:$0xff]  ;;  %v630_v4 = vld [vmem:[%s885_s8 + $0x30] sm:$0xff]  ;;  %v629_v5 = vld [vmem:[%s885_s8 + $0x28] sm:$0xff] }
   0xc   :  { %125 = vmatpush.bf16.msra.mxu1 %v499_v8  ;;  %111 = vmatpush.bf16.msra.mxu0 %v503_v37  ;;  %v447_v2 = vld [vmem:[%s884_s12] sm:$0xf]  ;;  %v626_v15 = vld [vmem:[%s885_s8 + $0x10] sm:$0xff] }
   0xd   :  { %561 = vmatpush.msk.msrb.mxu2 %vm287_vm3, %v283_v50  ;;  %v628_v8 = vld [vmem:[%s885_s8 + $0x20] sm:$0xff] }
   0xe   :  { %v637_v37 = vld [vmem:[%s886_s9] ss:$0 sm:$0xff] }
   0xf   :  { %271 = vmatpush.bf16.msra.mxu3 %v621_v51 }
  0x10   :  { %126 = vmatpush.bf16.msra.mxu1 %v491_v11  ;;  %112 = vmatpush.bf16.msra.mxu0 %v495_v40 }
  0x13   :  { %517 = vmatmul.msk.bf16.vlgmr.msra.gmra.mxu1 %vm102_vm0, %v47_v12  ;;  %272 = vmatpush.bf16.msra.mxu3 %v620_v52 }
  0x14   :  { %113 = vmatpush.bf16.msra.mxu0 %v487_v43  ;;  %v638_v43 = vld [vmem:[%s888_s11] ss:$0 sm:$0xff] }
  0x17   :  { %516 = vmatmul.msk.bf16.vlgmr.msra.gmra.mxu0 %vm102_vm0, %v47_v12  ;;  %273 = vmatpush.bf16.msra.mxu3 %v619_v53  ;;  %v627_v12 = vld [vmem:[%s885_s8 + $0x18] sm:$0xff] }
  0x18   :  { %381 = vmatpush.bf16.msrb.mxu0 %v631_v3 }
  0x1b   :  { %274 = vmatpush.bf16.msra.mxu3 %v618_v54 }
  0x1c   :  { %382 = vmatpush.bf16.msrb.mxu0 %v630_v4 }
  0x1f   :  { %275 = vmatpush.bf16.msra.mxu3 %v617_v56 }
  0x20   :  { %383 = vmatpush.bf16.msrb.mxu0 %v629_v5 }
  0x23   :  { %276 = vmatpush.bf16.msra.mxu3 %v616_v59 }
  0x24   :  { %384 = vmatpush.bf16.msrb.mxu0 %v628_v8 }
  0x28   :  { %385 = vmatpush.bf16.msrb.mxu0 %v627_v12 }
  0x2c   :  { %386 = vmatpush.bf16.msrb.mxu0 %v626_v15 }
  0x90   :  { %v128_v17 = vpop.f32.mrf.mxu1 }
  0x91   :  { %v129_v18 = vadd.f32 %v128_v17, %v59_v16 }
  0x93   :  { %v133_v19 = vmax.f32 %v129_v18, 0.0 }
  0x94   :  { %v115_v57 = vpop.f32.mrf.mxu0 }
  0x95   :  { %v135_v20 = vpack.c.bf16 %v133_v19, %v133_v19  ;;  %v116_v58 = vadd.f32 %v115_v57, %v58_v55  ;;  %v625_v19 = vld [vmem:[%s885_s8 + $0x8] sm:$0xff] }
  0x96   :  { %387 = vmatpush.bf16.msrb.mxu0 %v625_v19 }
  0x97   :  { %526 = vmatmul.msk.bf16.vlgmr.msra.gmra.mxu2 %vm156_vm1, %v135_v20  ;;  %v132_v60 = vmax.f32 %v116_v58, 0.0 }
  0x98   :  { %v130_v21 = vpop.f32.mrf.mxu1  ;;  %604 = vmatpush.msk.msra.mxu2 %vm287_vm3, %v447_v2 }
  0x99   :  { %v134_v62 = vpack.c.bf16 %v132_v60, %v132_v60 }
  0x9b   :  { %277 = vmatmul.bf16.vlgmr.msra.gmra.mxu3 %v134_v62 }
  0x9c   :  { %v117_v1 = vpop.f32.mrf.mxu0 }
 0x11a   :  { %v169_v23 = vpop.f32.mrf.mxu2 }
 0x11b   :  { %v170_v24 = vadd.f32 %v635_v22, %v169_v23 }
 0x11d   :  { %v174_v25 = vsel %vm173_vm2, %v170_v24, -inf }
 0x11e   :  { %175 = vmax.xlane.f32.xlu0 %v174_v25  ;;  %v278_v23 = vpop.f32.mrf.mxu3 }
 0x122   :  { %v171_v26 = vpop.f32.mrf.mxu2 }
 0x123   :  { %v624_v26 = vld [vmem:[%s885_s8] sm:$0xff] }
 0x124   :  { %388 = vmatpush.bf16.msrb.mxu0 %v624_v26 }
 0x126   :  { %v280_v25 = vpop.f32.mrf.mxu3 }
 0x191   :  { %v176_v27 = vpop.xlane.xlu0 %175 }
 0x192   :  { %v177_v28 = vsub.f32 %v170_v24, %v176_v27  ;;  %v633_v27 = vld [vmem:[%s887_s10 + $0x8] sm:$0xff] }
 0x193   :  { %425 = vmatpush.bf16.msrb.mxu1 %v633_v27 }
 0x194   :  { %v178_v29 = vmul.f32 1.442695, %v177_v28  ;;  %v632_v28 = vld [vmem:[%s887_s10] sm:$0xff] }
 0x196   :  { %639 = vpow2.f32 %v178_v29  ;;  %v636_v29 = vld [vmem:[%s883_s6] ss:$0 sm:$0xff] }
 0x197   :  { %426 = vmatpush.bf16.msrb.mxu1 %v632_v28 }
 0x19c   :  { %v640_v30 = vpop.eup %639 }
 0x19d   :  { %v180_v31 = vsel %vm173_vm2, %v640_v30, 0.0 }
 0x19e   :  { %181 = vadd.xlane.f32.xlu0 %v180_v31 }
 0x211   :  { %v182_v44 = vpop.xlane.xlu0 %181 }
 0x212   :  { %641 = vrcp.f32 %v182_v44 }
 0x218   :  { %v642_v45 = vpop.eup %641 }
 0x219   :  { %v184_v46 = vmul.f32 %v642_v45, %v640_v30  ;;  %v279_v30 = vadd.f32 %v636_v29, %v278_v23 }
 0x21b   :  { %v185_v47 = vsel %vm173_vm2, %v184_v46, -inf  ;;  %v282_v31 = vmax.f32 %v279_v30, 0.0 }
 0x21c   :  { %186 = vmax.xlane.f32.xlu1 %v185_v47 }
 0x28f   :  { %v187_v61 = vpop.xlane.xlu1 %186 }
 0x290   :  { %vm188_vm4 = vcmp.ge.f32.partialorder %v184_v46, %v187_v61 }
 0x291   :  { %v192_v63 = vsel %vm188_vm4, -1e+30, %v184_v46  ;;  %v527_v7 = vsel %vm188_vm4, 1.0, %v643_v6 }
 0x292   :  { %v193_v0 = vsel %vm173_vm2, %v192_v63, -inf  ;;  %v191_v10 = vmax.f32 %v527_v7, 0.0 }
 0x293   :  { %194 = vmax.xlane.f32.xlu1 %v193_v0 }
 0x306   :  { %v195_v9 = vpop.xlane.xlu1 %194 }
 0x307   :  { %vm196_vm5 = vcmp.ge.f32.partialorder %v192_v63, %v195_v9 }
 0x308   :  { %v528_v11 = vsel %vm196_vm5, 1.0, %v643_v6 }
 0x309   :  { %v199_v13 = vmax.f32 %v191_v10, %v528_v11 }
 0x30b   :  { %v200_v14 = vmul.f32 %v199_v13, %v184_v46 }
 0x30d   :  { %v440_v16 = vsel %vm173_vm2, %v200_v14, 0.0  ;;  %562 = vmatmul.msk.f32.vlgmr.msrb.gmra.mxu2 %vm173_vm2, %v200_v14 }
 0x30e   :  { %v441_v17 = vrot.slane %v440_v16, 4 }
 0x310   :  { %v442_v18 = vadd.f32 %v441_v17, %v440_v16 }
 0x312   :  { %v443_v20 = vrot.slane %v442_v18, 2 }
 0x314   :  { %v444_v21 = vadd.f32 %v443_v20, %v442_v18 }
 0x316   :  { %v445_v22 = vrot.slane %v444_v21, 1 }
 0x318   :  { %v446_v24 = vadd.f32 %v445_v22, %v444_v21 }
 0x31a   :  { %605 = vmatmul.msk.f32.vlgmr.msra.gmra.mxu2 %vm173_vm2, %v446_v24 }
 0x390   :  { %v308_v32 = vpop.f32.mrf.mxu2 }
 0x391   :  { %v311_v33 = vmul.f32 %v308_v32, %v282_v31 }
 0x393   :  { %v312_v34 = vpack.c.bf16 %v311_v33, %v311_v33 }
 0x395   :  { %389 = vmatmul.bf16.vlgmr.msrb.gmra.mxu0 %v312_v34 }
 0x39d   :  { %v471_v35 = vpop.f32.mrf.mxu2 }
 0x39e   :  { %v474_v36 = vperm.slane %v471_v35, 0 }
 0x3a0   :  { %475 = vst [vmem:[%s889_s14] sm:$0xff] %v474_v36 }
 0x412   :  { %v390_v38 = vpop.f32.mrf.mxu0 }
 0x413   :  { %v391_v39 = vadd.f32 %v637_v37, %v390_v38 }
 0x415   :  { %v394_v40 = vmax.f32 %v391_v39, 0.0 }
 0x417   :  { %v395_v41 = vpack.c.bf16 %v394_v40, %v394_v40 }
 0x419   :  { %603 = vmatmul.msk.bf16.vlgmr.msrb.gmra.mxu1 %vm156_vm1, %v395_v41 }
 0x41a   :  { %v392_v42 = vpop.f32.mrf.mxu0 }
 0x496   :  { %v428_v44 = vpop.f32.mrf.mxu1 }
 0x497   :  { %v429_v45 = vadd.f32 %v638_v43, %v428_v44 }
 0x499   :  { %432 = vst [vmem:[%s890_s13] sm:$0xff] %v429_v45 }
 0x49e   :  { %v430_v46 = vpop.f32.mrf.mxu1 }

</bundles_post_ra>
